<compile_context>
chip_gen: v7x
topology: tpu7x:2x2x1
jax: 0.10.0
libtpu: 0.0.40
codegen_flags: <defaults>
</compile_context>

<pallas_src>
import functools

import jax
import jax.numpy as jnp
from jax.experimental import pallas as pl
from jax.experimental.pallas import tpu as pltpu


def _round_up(x, m):
    return ((x + m - 1) // m) * m


def _vq_kernel(x_ref, cb2_ref, cbsq_ref, idx_ref, *, nb):
    """One grid step: nearest-codebook indices for `nb` images x one lane tile.

    x_ref:    (nb, D, TM)  activations (channels on sublanes, positions on lanes)
    cb2_ref:  (Kp, D)      codebook pre-scaled by 2 (grid-invariant block)
    cbsq_ref: (Kp, 1)      precomputed ||c_k||^2 (+inf on padded rows)
    idx_ref:  (nb, TM)     int32 argmin indices (lane-dense output)
    """
    cb2 = cb2_ref[...]
    cbsq = cbsq_ref[...]
    kp = cb2.shape[0]
    for b in range(nb):                       # static unroll; nb is small
        x = x_ref[b]                          # (D, TM)
        # MXU: 2 * <c_k, x_m> -> (Kp, TM), f32 accumulate.
        xc = jnp.dot(cb2, x, preferred_element_type=jnp.float32)
        # argmin_k (||c_k||^2 - 2<c_k, x_m>) == argmin_k of the full distance.
        dist = cbsq - xc                      # single VPU pass (x2 pre-folded)
        min_d = jnp.min(dist, axis=0, keepdims=True)                # (1, TM)
        iota = jax.lax.broadcasted_iota(jnp.int32, dist.shape, 0)   # (Kp, TM)
        cand = jnp.where(dist <= min_d, iota, jnp.int32(kp))
        # First-index tie-break (matches torch.min); padded rows never win.
        idx_ref[pl.ds(b, 1), :] = jnp.min(
            cand, axis=0, keepdims=True).astype(jnp.int32)


def _tpu_vmem_capacity_bytes():
    try:
        return int(pltpu.get_tpu_info().vmem_capacity_bytes)
    except Exception:
        return 64 << 20  # conservative (v7x-sized) fallback


def _estimate_vmem_bytes(nb, d, tile, kp, x_bytes, cb_bytes):
    d_sub = _round_up(d, 8)
    d_lane = _round_up(d, 128)
    x_buf = 2 * nb * d_sub * tile * x_bytes      # double-buffered x tile
    cb_buf = 2 * kp * d_lane * cb_bytes          # codebook block
    cbsq_buf = 2 * kp * 128 * 4                  # (Kp, 1) lane-padded
    out_buf = 2 * nb * tile * 4
    temps = 5 * kp * tile * 4                    # xc/dist/iota/cand temps
    return x_buf + cb_buf + cbsq_buf + out_buf + temps


def _pick_blocking(n, hw, d, kp, tile_hw, x_bytes, cb_bytes, budget):
    # Clamp user tile to a lane multiple (>=128) so stores stay unmasked.
    tile = max(128, (int(tile_hw) // 128) * 128)
    hw128 = _round_up(hw, 128)
    tile = min(tile, hw128)
    while tile > 128 and _estimate_vmem_bytes(
            1, d, tile, kp, x_bytes, cb_bytes) > budget:
        tile -= 128
    nb = 1
    if tile >= hw128:
        # Whole image fits one lane tile: block several batch images per grid
        # step.  nb == n keeps the output block a full array dim; otherwise a
        # multiple of 8 keeps the sublane block legal.
        if n <= 32 and _estimate_vmem_bytes(
                n, d, tile, kp, x_bytes, cb_bytes) <= budget:
            nb = n
        else:
            cand = (n // 8) * 8
            while cand >= 8:
                if _estimate_vmem_bytes(
                        cand, d, tile, kp, x_bytes, cb_bytes) <= budget:
                    nb = cand
                    break
                cand -= 8
    return tile, nb


def vq_latents(z_e_x, codebook, *, tile_hw=1024, use_bf16_matmul=False,
               single_buffer_codebook=False):
    """z_e_x: (N, C, H, W) float, codebook: (K, C) float -> (N, H, W) int32."""
    N, C, H, W = z_e_x.shape
    K, D = codebook.shape
    assert C == D
    HW = H * W

    # bf16 only pays for large D (MXU-bound regime); keep f32 by default so
    # argmin tie-breaking stays bit-exact with the f32 reference.
    x_dtype = jnp.bfloat16 if use_bf16_matmul else jnp.float32
    x_bytes = 2 if use_bf16_matmul else 4

    # VMEM budgeting: one code path for v5e/v6e (128 MiB) and v7x (64 MiB).
    cap = _tpu_vmem_capacity_bytes()
    budget = cap // 2
    vmem_limit = (cap * 3) // 4

    # Hoisted codebook prep (done once in the wrapper, not per grid step).
    cb = codebook.astype(jnp.float32)
    cb_sqr = jnp.sum(cb * cb, axis=1, keepdims=True)            # (K, 1) f32
    cb2 = (cb * 2.0).astype(x_dtype)                            # exact pow-2 scale
    k_pad = _round_up(K, 128)
    if k_pad != K:
        cb2 = jnp.pad(cb2, ((0, k_pad - K), (0, 0)))
        cb_sqr = jnp.pad(cb_sqr, ((0, k_pad - K), (0, 0)),
                         constant_values=jnp.inf)

    tile, nb = _pick_blocking(N, HW, D, k_pad, tile_hw, x_bytes, x_bytes, budget)
    hw_pad = _round_up(HW, tile)
    n_pad = _round_up(N, nb)

    # Fused NCHW->NHWC: channels stay on the sublane axis, spatial positions on
    # the lane axis; the reshape is free (no HBM transpose).
    z = z_e_x.reshape(N, D, HW).astype(x_dtype)
    if hw_pad != HW or n_pad != N:
        z = jnp.pad(z, ((0, n_pad - N), (0, 0), (0, hw_pad - HW)))

    grid = (n_pad // nb, hw_pad // tile)

    cb_specs = [
        pl.BlockSpec((k_pad, D), lambda n, j: (0, 0)),
        pl.BlockSpec((k_pad, 1), lambda n, j: (0, 0)),
    ]
    if single_buffer_codebook:
        # Grid-invariant blocks never need a second fetch; single-buffering
        # frees VMEM (mainly useful on v7x's 64 MiB).
        try:
            cb_specs = [
                pl.BlockSpec((k_pad, D), lambda n, j: (0, 0),
                             pipeline_mode=pl.Buffered(1)),
                pl.BlockSpec((k_pad, 1), lambda n, j: (0, 0),
                             pipeline_mode=pl.Buffered(1)),
            ]
        except TypeError:
            pass

    kernel = functools.partial(_vq_kernel, nb=nb)
    out = pl.pallas_call(
        kernel,
        out_shape=jax.ShapeDtypeStruct((n_pad, hw_pad), jnp.int32),
        grid_spec=pltpu.PrefetchScalarGridSpec(
            num_scalar_prefetch=0,
            grid=grid,
            in_specs=[pl.BlockSpec((nb, D, tile), lambda n, j: (n, 0, j))]
                     + cb_specs,
            out_specs=pl.BlockSpec((nb, tile), lambda n, j: (n, j)),
        ),
        compiler_params=pltpu.CompilerParams(
            dimension_semantics=("parallel", "parallel"),
            vmem_limit_bytes=int(vmem_limit)),
    )(z, cb2, cb_sqr)

    return out[:N, :HW].reshape(N, H, W)


class VQEmbedding:
    """JAX/Pallas port of the PyTorch VQEmbedding module (forward pass only)."""

    def __init__(self, K, D, key):
        # nn.Embedding(K, D) with weight.uniform_(-1/K, 1/K)
        self.K = K
        self.D = D
        self.weight = jax.random.uniform(
            key, (K, D), dtype=jnp.float32, minval=-1.0 / K, maxval=1.0 / K)

    def forward(self, z_e_x):
        # z_e_x: (N, C, H, W) float32, C == D
        assert z_e_x.shape[1] == self.D
        return vq_latents(z_e_x, self.weight)
    # TODO(synk): straight_through() (codebook gather + index_add backward) is
    # not part of the requested forward pass and is not implemented here.


def _reference(z_e_x, codebook):
    z_nhwc = jnp.transpose(z_e_x, (0, 2, 3, 1))
    flat = z_nhwc.reshape(-1, codebook.shape[1])
    d = (jnp.sum(flat ** 2, axis=1, keepdims=True)
         + jnp.sum(codebook ** 2, axis=1)[None, :]
         - 2.0 * flat @ codebook.T)
    return jnp.argmin(d, axis=1).reshape(
        z_e_x.shape[0], z_e_x.shape[2], z_e_x.shape[3]).astype(jnp.int32)


if __name__ == "__main__":
    key = jax.random.PRNGKey(0)
    k_w, k_x1, k_x2 = jax.random.split(key, 3)

    # Case 1: standard small shape (exercises K padding 32 -> 128 and the
    # multi-image batch block: both images share one grid step).
    N, C, H, W = 2, 4, 16, 16
    K = 32
    vq_emb = VQEmbedding(K, C, k_w)
    z_e_x = jax.random.normal(k_x1, (N, C, H, W), dtype=jnp.float32)

    latents = jax.block_until_ready(vq_emb.forward(z_e_x))
    ref = _reference(z_e_x, vq_emb.weight)
    assert latents.shape == (N, H, W)
    assert latents.dtype == jnp.int32
    assert bool(jnp.all(latents == ref))

    # Case 2: non-multiple spatial size (exercises H*W padding / tail slice).
    N2, H2, W2 = 1, 7, 9
    z_e_x2 = jax.random.normal(k_x2, (N2, C, H2, W2), dtype=jnp.float32)
    latents2 = jax.block_until_ready(vq_emb.forward(z_e_x2))
    ref2 = _reference(z_e_x2, vq_emb.weight)
    assert latents2.shape == (N2, H2, W2)
    assert latents2.dtype == jnp.int32
    assert bool(jnp.all(latents2 == ref2))

    print("KERNEL_OK")
</pallas_src>

<mosaic_0001>
module attributes {stable_mosaic.version = 11 : i64} {
  func.func @_vq_kernel(%arg0: i32, %arg1: i32, %arg2: memref<2x4x256xf32, #tpu.memory_space<vmem>>, %arg3: memref<128x4xf32, #tpu.memory_space<vmem>>, %arg4: memref<128x1xf32, #tpu.memory_space<vmem>>, %arg5: memref<2x256xi32, #tpu.memory_space<vmem>>) attributes {dimension_semantics = [#tpu.dimension_semantics<parallel>, #tpu.dimension_semantics<parallel>], iteration_bounds = array<i64: 1, 1>, scalar_prefetch = 0 : i64, scratch_operands = 0 : i64, tpu.core_type = #tpu.core_type<tc>, window_params = [{transform_indices = @transform_0, window_bounds = array<i64: 2, 4, 256>}, {pipeline_mode = #tpu.pipeline_mode<synchronous>, transform_indices = @transform_1, window_bounds = array<i64: 128, 4>}, {pipeline_mode = #tpu.pipeline_mode<synchronous>, transform_indices = @transform_2, window_bounds = array<i64: 128, 1>}, {transform_indices = @transform_3, window_bounds = array<i64: 2, 256>}]} {
    %c0 = arith.constant 0 : index
    %c0_0 = arith.constant 0 : index
    %0 = vector.load %arg3[%c0, %c0_0] : memref<128x4xf32, #tpu.memory_space<vmem>>, vector<128x4xf32>
    %c0_1 = arith.constant 0 : index
    %c0_2 = arith.constant 0 : index
    %1 = vector.load %arg4[%c0_1, %c0_2] : memref<128x1xf32, #tpu.memory_space<vmem>>, vector<128x1xf32>
    %c0_3 = arith.constant 0 : index
    %c0_4 = arith.constant 0 : index
    %c0_5 = arith.constant 0 : index
    %2 = vector.load %arg2[%c0_3, %c0_4, %c0_5] : memref<2x4x256xf32, #tpu.memory_space<vmem>>, vector<1x4x256xf32>
    %3 = vector.shape_cast %2 : vector<1x4x256xf32> to vector<4x256xf32>
    %cst = arith.constant dense<0.000000e+00> : vector<128x256xf32>
    %4 = tpu.matmul %0, %3, %cst {dimension_numbers = #tpu.dot_dimension_numbers<[1], [0], [0], [1], [0, 0, 1, 1], [], []>} : vector<128x4xf32>, vector<4x256xf32>, vector<128x256xf32> -> vector<128x256xf32>
    %5 = vector.broadcast %1 : vector<128x1xf32> to vector<128x256xf32>
    %6 = arith.subf %5, %4 : vector<128x256xf32>
    %cst_6 = arith.constant dense<0x7F800000> : vector<256xf32>
    %7 = vector.multi_reduction <minimumf>, %6, %cst_6 [0] : vector<128x256xf32> to vector<256xf32>
    %8 = vector.shape_cast %7 : vector<256xf32> to vector<1x256xf32>
    %9 = tpu.iota {dimensions = array<i32: 0>} : vector<128x256xi32>
    %10 = vector.broadcast %8 : vector<1x256xf32> to vector<128x256xf32>
    %11 = arith.cmpf ole, %6, %10 : vector<128x256xf32>
    %c128_i32 = arith.constant 128 : i32
    %12 = vector.broadcast %c128_i32 : i32 to vector<128x256xi32>
    %13 = arith.select %11, %9, %12 : vector<128x256xi1>, vector<128x256xi32>
    %cst_7 = arith.constant dense<2147483647> : vector<256xi32>
    %14 = vector.multi_reduction <minsi>, %13, %cst_7 [0] : vector<128x256xi32> to vector<256xi32>
    %15 = vector.shape_cast %14 : vector<256xi32> to vector<1x256xi32>
    %c0_8 = arith.constant 0 : index
    %c0_9 = arith.constant 0 : index
    %16 = vector.load %arg5[%c0_8, %c0_9] : memref<2x256xi32, #tpu.memory_space<vmem>>, vector<1x256xi32>
    tpu.vector_store %arg5[%c0_8, %c0_9], %15 {strides = array<i32>} : memref<2x256xi32, #tpu.memory_space<vmem>>, vector<1x256xi32>,
    %c1 = arith.constant 1 : index
    %c0_10 = arith.constant 0 : index
    %c0_11 = arith.constant 0 : index
    %17 = vector.load %arg2[%c1, %c0_10, %c0_11] : memref<2x4x256xf32, #tpu.memory_space<vmem>>, vector<1x4x256xf32>
    %18 = vector.shape_cast %17 : vector<1x4x256xf32> to vector<4x256xf32>
    %cst_12 = arith.constant dense<0.000000e+00> : vector<128x256xf32>
    %19 = tpu.matmul %0, %18, %cst_12 {dimension_numbers = #tpu.dot_dimension_numbers<[1], [0], [0], [1], [0, 0, 1, 1], [], []>} : vector<128x4xf32>, vector<4x256xf32>, vector<128x256xf32> -> vector<128x256xf32>
    %20 = vector.broadcast %1 : vector<128x1xf32> to vector<128x256xf32>
    %21 = arith.subf %20, %19 : vector<128x256xf32>
    %cst_13 = arith.constant dense<0x7F800000> : vector<256xf32>
    %22 = vector.multi_reduction <minimumf>, %21, %cst_13 [0] : vector<128x256xf32> to vector<256xf32>
    %23 = vector.shape_cast %22 : vector<256xf32> to vector<1x256xf32>
    %24 = tpu.iota {dimensions = array<i32: 0>} : vector<128x256xi32>
    %25 = vector.broadcast %23 : vector<1x256xf32> to vector<128x256xf32>
    %26 = arith.cmpf ole, %21, %25 : vector<128x256xf32>
    %c128_i32_14 = arith.constant 128 : i32
    %27 = vector.broadcast %c128_i32_14 : i32 to vector<128x256xi32>
    %28 = arith.select %26, %24, %27 : vector<128x256xi1>, vector<128x256xi32>
    %cst_15 = arith.constant dense<2147483647> : vector<256xi32>
    %29 = vector.multi_reduction <minsi>, %28, %cst_15 [0] : vector<128x256xi32> to vector<256xi32>
    %30 = vector.shape_cast %29 : vector<256xi32> to vector<1x256xi32>
    %c1_16 = arith.constant 1 : index
    %c0_17 = arith.constant 0 : index
    %31 = vector.load %arg5[%c1_16, %c0_17] : memref<2x256xi32, #tpu.memory_space<vmem>>, vector<1x256xi32>
    tpu.vector_store %arg5[%c1_16, %c0_17], %30 {strides = array<i32>} : memref<2x256xi32, #tpu.memory_space<vmem>>, vector<1x256xi32>,
    return
  }
  func.func @transform_0(%arg0: i32, %arg1: i32) -> (i32, i32, i32) {
    %c0_i32 = arith.constant 0 : i32
    %c0_i32_0 = arith.constant 0 : i32
    return %arg0, %c0_i32, %arg1 : i32, i32, i32
  }
  func.func @transform_1(%arg0: i32, %arg1: i32) -> (i32, i32) {
    %c0_i32 = arith.constant 0 : i32
    %c0_i32_0 = arith.constant 0 : i32
    %c0_i32_1 = arith.constant 0 : i32
    return %c0_i32, %c0_i32_0 : i32, i32
  }
  func.func @transform_2(%arg0: i32, %arg1: i32) -> (i32, i32) {
    %c0_i32 = arith.constant 0 : i32
    %c0_i32_0 = arith.constant 0 : i32
    %c0_i32_1 = arith.constant 0 : i32
    return %c0_i32, %c0_i32_0 : i32, i32
  }
  func.func @transform_3(%arg0: i32, %arg1: i32) -> (i32, i32) {
    %c0_i32 = arith.constant 0 : i32
    return %arg0, %arg1 : i32, i32
  }
}

</mosaic_0001>

<bundles_post_ra>
// kernel: tpu_custom_call.1
= control target key start
LH: loop header
LB: loop body
LE: loop exit
PB: predicated region body
PF: predicated region fallthrough
CT: control target
= control target key end

     0   :  { %vm99_vm0 = vcmask 1043456   ;;  %v1083_v4 = vmov 0.0   ;;  %vm50_vm1 = vcmask 31744   ;;  %v1084_v6 = vmov 0   ;;  %s1967_s0 = inlined_call_operand.vmem [shape: f32[2,4,256], index: 0, kind: input, shape index: {}]   ;;  %s1968_s1 = inlined_call_operand.vmem [shape: f32[128,4], index: 1, kind: input, shape index: {}]   ;;  %s1969_s2 = inlined_call_operand.vmem [shape: f32[128,1], index: 2, kind: input, shape index: {}]   ;;  %s1970_s3 = inlined_call_operand.hbm [shape: s32[2,256], index: 3, kind: output, shape index: {}]  }
   0x1   :  { %v47_v0 = vld [vmem:[%s1967_s0] sm:$0xff]  ;;  %v1032_v1 = vld [vmem:[%s1967_s0 + $0x8] sm:$0xff]  ;;  %168 = vmatprep.mubr.f32.mxu0 %v1083_v4  ;;  %670 = vmatprep.mubr.f32.mxu1 %v1083_v4  ;;  %v33_v9 = vld [vmem:[%s1969_s2 + $0x10] sm:$0xff] }
   0x2   :  { %v49_v2 = vcombine.high %v47_v0, %v47_v0  ;;  %v601_v3 = vcombine.high %v1032_v1, %v1032_v1  ;;  %v15_v5 = vld [vmem:[%s1968_s1] sm:$0xff]  ;;  %1055 = vset.pattern.permute.xlu0 %v1084_v6  ;;  %1056 = vset.pattern.permute.xlu1 %v1084_v6  ;;  %v16_v7 = vld [vmem:[%s1968_s1 + $0x8] sm:$0xff]  ;;  %v34_v11 = vld [vmem:[%s1969_s2 + $0x18] sm:$0xff] }
   0x3   :  { %v31_v8 = vld [vmem:[%s1969_s2] sm:$0xff]  ;;  %277 = vperm.xlu1 %1056, %v33_v9   ;;  %v32_v10 = vld [vmem:[%s1969_s2 + $0x8] sm:$0xff]  ;;  %v17_v12 = vld [vmem:[%s1968_s1 + $0x10] sm:$0xff] }
   0x4   :  { %1014 = vmatprep.subr.msk.mxu0 %vm99_vm0, %v49_v2  ;;  %1033 = vmatprep.subr.msk.mxu1 %vm99_vm0, %v601_v3 }
   0x5   :  { %1015 = vmatpush1.msk.msra.mxu0 %vm99_vm0, %v47_v0  ;;  %1034 = vmatpush1.msk.msra.mxu1 %vm99_vm0, %v1032_v1 }
   0x6   :  { %1016 = vmatmul.mubr.msk.f32.vlgmr.msra.gmra.mrb[0].mxu0 %vm50_vm1, %v15_v5  ;;  %1035 = vmatmul.mubr.msk.f32.vlgmr.msra.gmra.mrb[0].mxu1 %vm50_vm1, %v15_v5 }
   0x7   :  { %174 = vmatprep.mubr.f32.mxu0 %v1083_v4  ;;  %676 = vmatprep.mubr.f32.mxu1 %v1083_v4 }
   0x8   :  { %267 = vperm.xlu0 %1055, %v31_v8   ;;  %282 = vperm.xlu1 %1056, %v34_v11  }
   0xa   :  { %1017 = vmatmul.mubr.msk.f32.gmra.mrb[2].mxu0 %vm50_vm1, %v16_v7  ;;  %1036 = vmatmul.mubr.msk.f32.gmra.mrb[2].mxu1 %vm50_vm1, %v16_v7 }
   0xb   :  { %180 = vmatprep.mubr.f32.mxu0 %v1083_v4  ;;  %682 = vmatprep.mubr.f32.mxu1 %v1083_v4 }
   0xc   :  { %272 = vperm.xlu0 %1055, %v32_v10  }
   0xd   :  { %8 = vsyncpa [#allocation3], 0  ;;  %v36_v13 = vld [vmem:[%s1969_s2 + $0x28] sm:$0xff]  ;;  %v35_v14 = vld [vmem:[%s1969_s2 + $0x20] sm:$0xff] }
   0xe   :  { %1018 = vmatmul.mubr.msk.f32.gmra.mrb[4].mxu0 %vm50_vm1, %v17_v12  ;;  %1037 = vmatmul.mubr.msk.f32.gmra.mrb[4].mxu1 %vm50_vm1, %v17_v12  ;;  %v18_v15 = vld [vmem:[%s1968_s1 + $0x18] sm:$0xff]  ;;  %v37_v17 = vld [vmem:[%s1969_s2 + $0x30] sm:$0xff]  ;;  %v19_v18 = vld [vmem:[%s1968_s1 + $0x20] sm:$0xff] }
   0xf   :  { %186 = vmatprep.mubr.f32.mxu0 %v1083_v4  ;;  %688 = vmatprep.mubr.f32.mxu1 %v1083_v4  ;;  %v38_v16 = vld [vmem:[%s1969_s2 + $0x38] sm:$0xff]  ;;  %v40_v19 = vld [vmem:[%s1969_s2 + $0x48] sm:$0xff]  ;;  %v39_v20 = vld [vmem:[%s1969_s2 + $0x40] sm:$0xff] }
  0x10   :  { %292 = vperm.xlu1 %1056, %v36_v13   ;;  %287 = vperm.xlu0 %1055, %v35_v14   ;;  %v20_v21 = vld [vmem:[%s1968_s1 + $0x28] sm:$0xff]  ;;  %v42_v22 = vld [vmem:[%s1969_s2 + $0x58] sm:$0xff]  ;;  %v41_v23 = vld [vmem:[%s1969_s2 + $0x50] sm:$0xff] }
  0x11   :  { %v21_v24 = vld [vmem:[%s1968_s1 + $0x30] sm:$0xff]  ;;  %v44_v25 = vld [vmem:[%s1969_s2 + $0x68] sm:$0xff]  ;;  %v43_v26 = vld [vmem:[%s1969_s2 + $0x60] sm:$0xff] }
  0x12   :  { %1019 = vmatmul.mubr.msk.f32.gmra.mrb[6].mxu0 %vm50_vm1, %v18_v15  ;;  %1038 = vmatmul.mubr.msk.f32.gmra.mrb[6].mxu1 %vm50_vm1, %v18_v15  ;;  %v22_v27 = vld [vmem:[%s1968_s1 + $0x38] sm:$0xff]  ;;  %v45_v29 = vld [vmem:[%s1969_s2 + $0x70] sm:$0xff]  ;;  %v23_v30 = vld [vmem:[%s1968_s1 + $0x40] sm:$0xff] }
  0x13   :  { %192 = vmatprep.mubr.f32.mxu0 %v1083_v4  ;;  %694 = vmatprep.mubr.f32.mxu1 %v1083_v4  ;;  %v46_v28 = vld [vmem:[%s1969_s2 + $0x78] sm:$0xff]  ;;  %v24_v31 = vld [vmem:[%s1968_s1 + $0x48] sm:$0xff]  ;;  %v25_v32 = vld [vmem:[%s1968_s1 + $0x50] sm:$0xff] }
  0x14   :  { %302 = vperm.xlu1 %1056, %v38_v16   ;;  %297 = vperm.xlu0 %1055, %v37_v17   ;;  %v26_v33 = vld [vmem:[%s1968_s1 + $0x58] sm:$0xff]  ;;  %v27_v34 = vld [vmem:[%s1968_s1 + $0x60] sm:$0xff]  ;;  %v28_v35 = vld [vmem:[%s1968_s1 + $0x68] sm:$0xff] }
  0x15   :  { %v29_v36 = vld [vmem:[%s1968_s1 + $0x70] sm:$0xff]  ;;  %v30_v37 = vld [vmem:[%s1968_s1 + $0x78] sm:$0xff]  ;;  %s1086_s1 = smov [#allocation2]  }
  0x16   :  { %1020 = vmatmul.mubr.msk.f32.gmra.mrb[8].mxu0 %vm50_vm1, %v19_v18  ;;  %1039 = vmatmul.mubr.msk.f32.gmra.mrb[8].mxu1 %vm50_vm1, %v19_v18  ;;  %s1006_s22 = sshll.u32 %s1086_s1, 4  ;;  %s1007_s22 = int_to_ptr.vmem [resolvable:$true] %s1006_s22 }
  0x17   :  { %198 = vmatprep.mubr.f32.mxu0 %v1083_v4  ;;  %700 = vmatprep.mubr.f32.mxu1 %v1083_v4  ;;  %s1059_s23 = scalar_lea.vmem %s1007_s22, 64  ;;  %p1064_p1 = scmp.lt.s32.totalorder %s1007_s22, %s1007_s22 }
  0x18   :  { %312 = vperm.xlu1 %1056, %v40_v19   ;;  %307 = vperm.xlu0 %1055, %v39_v20   ;;  %p1060_p0 = scmp.ne.s32.totalorder %s1007_s22, %s1059_s23  ;;  %p1065_p2 = scmp.lt.s32.totalorder %s1059_s23, %s1059_s23 }
  0x1a   :  { %1021 = vmatmul.mubr.msk.f32.gmra.mrb[10].mxu0 %vm50_vm1, %v20_v21  ;;  %1040 = vmatmul.mubr.msk.f32.gmra.mrb[10].mxu1 %vm50_vm1, %v20_v21  ;;  %p1066_p3 = por %p1065_p2, %p1064_p1 }
  0x1b   :  { %204 = vmatprep.mubr.f32.mxu0 %v1083_v4  ;;  %706 = vmatprep.mubr.f32.mxu1 %v1083_v4 }
  0x1c   :  { %322 = vperm.xlu1 %1056, %v42_v22   ;;  %317 = vperm.xlu0 %1055, %v41_v23   ;;  %p1067_p4 = pnand %p1066_p3, %p1060_p0 }
  0x1e   :  { %1022 = vmatmul.mubr.msk.f32.gmra.mrb[12].mxu0 %vm50_vm1, %v21_v24  ;;  %1041 = vmatmul.mubr.msk.f32.gmra.mrb[12].mxu1 %vm50_vm1, %v21_v24 }
  0x1f   :  { %210 = vmatprep.mubr.f32.mxu0 %v1083_v4  ;;  %712 = vmatprep.mubr.f32.mxu1 %v1083_v4 }
  0x20   :  { %332 = vperm.xlu1 %1056, %v44_v25   ;;  %327 = vperm.xlu0 %1055, %v43_v26  }
  0x22   :  { %1023 = vmatmul.mubr.msk.f32.gmra.mrb[14].mxu0 %vm50_vm1, %v22_v27  ;;  %1042 = vmatmul.mubr.msk.f32.gmra.mrb[14].mxu1 %vm50_vm1, %v22_v27 }
  0x23   :  { %216 = vmatprep.mubr.f32.mxu0 %v1083_v4  ;;  %718 = vmatprep.mubr.f32.mxu1 %v1083_v4 }
  0x24   :  { %342 = vperm.xlu1 %1056, %v46_v28   ;;  %337 = vperm.xlu0 %1055, %v45_v29  }
  0x26   :  { %1024 = vmatmul.mubr.msk.f32.gmra.mrb[16].mxu0 %vm50_vm1, %v23_v30  ;;  %1043 = vmatmul.mubr.msk.f32.gmra.mrb[16].mxu1 %vm50_vm1, %v23_v30 }
  0x27   :  { %222 = vmatprep.mubr.f32.mxu0 %v1083_v4  ;;  %724 = vmatprep.mubr.f32.mxu1 %v1083_v4 }
  0x2a   :  { %1025 = vmatmul.mubr.msk.f32.gmra.mrb[18].mxu0 %vm50_vm1, %v24_v31  ;;  %1044 = vmatmul.mubr.msk.f32.gmra.mrb[18].mxu1 %vm50_vm1, %v24_v31 }
  0x2b   :  { %228 = vmatprep.mubr.f32.mxu0 %v1083_v4  ;;  %730 = vmatprep.mubr.f32.mxu1 %v1083_v4 }
  0x2e   :  { %1026 = vmatmul.mubr.msk.f32.gmra.mrb[20].mxu0 %vm50_vm1, %v25_v32  ;;  %1045 = vmatmul.mubr.msk.f32.gmra.mrb[20].mxu1 %vm50_vm1, %v25_v32 }
  0x2f   :  { %234 = vmatprep.mubr.f32.mxu0 %v1083_v4  ;;  %736 = vmatprep.mubr.f32.mxu1 %v1083_v4 }
  0x32   :  { %1027 = vmatmul.mubr.msk.f32.gmra.mrb[22].mxu0 %vm50_vm1, %v26_v33  ;;  %1046 = vmatmul.mubr.msk.f32.gmra.mrb[22].mxu1 %vm50_vm1, %v26_v33 }
  0x33   :  { %240 = vmatprep.mubr.f32.mxu0 %v1083_v4  ;;  %742 = vmatprep.mubr.f32.mxu1 %v1083_v4 }
  0x36   :  { %1028 = vmatmul.mubr.msk.f32.gmra.mrb[24].mxu0 %vm50_vm1, %v27_v34  ;;  %1047 = vmatmul.mubr.msk.f32.gmra.mrb[24].mxu1 %vm50_vm1, %v27_v34 }
  0x37   :  { %246 = vmatprep.mubr.f32.mxu0 %v1083_v4  ;;  %748 = vmatprep.mubr.f32.mxu1 %v1083_v4 }
  0x3a   :  { %1029 = vmatmul.mubr.msk.f32.gmra.mrb[26].mxu0 %vm50_vm1, %v28_v35  ;;  %1048 = vmatmul.mubr.msk.f32.gmra.mrb[26].mxu1 %vm50_vm1, %v28_v35 }
  0x3b   :  { %252 = vmatprep.mubr.f32.mxu0 %v1083_v4  ;;  %754 = vmatprep.mubr.f32.mxu1 %v1083_v4 }
  0x3e   :  { %1030 = vmatmul.mubr.msk.f32.gmra.mrb[28].mxu0 %vm50_vm1, %v29_v36  ;;  %1049 = vmatmul.mubr.msk.f32.gmra.mrb[28].mxu1 %vm50_vm1, %v29_v36 }
  0x3f   :  { %258 = vmatprep.mubr.f32.mxu0 %v1083_v4  ;;  %760 = vmatprep.mubr.f32.mxu1 %v1083_v4 }
  0x42   :  { %1031 = vmatmul.mubr.msk.f32.gmra.mrb[30].mxu0 %vm50_vm1, %v30_v37  ;;  %1050 = vmatmul.mubr.msk.f32.gmra.mrb[30].mxu1 %vm50_vm1, %v30_v37 }
  0x82   :  { %v278_v43 = vpop.permute.xlu1 %277 }
  0x87   :  { %v268_v42 = vpop.permute.xlu0 %267  ;;  %v283_v63 = vpop.permute.xlu1 %282 }
  0x8b   :  { %v273_v58 = vpop.permute.xlu0 %272 }
  0x8f   :  { %v288_v16 = vpop.permute.xlu0 %287  ;;  %v293_v27 = vpop.permute.xlu1 %292 }
  0xd9   :  { %v170_v38 = vpop.f32.mrb[0].mxu0  ;;  %v672_v39 = vpop.f32.mrb[0].mxu1 }
  0xda   :  { %v172_v40 = vpop.f32.mrb[1].mxu0  ;;  %v674_v41 = vpop.f32.mrb[1].mxu1  ;;  %v1273_v50 = vsub.f32 %v268_v42, %v170_v38  ;;  %v1275_v51 = vsub.f32 %v268_v42, %v672_v39 }
  0xdb   :  { %v1281_v56 = vsub.f32 %v268_v42, %v172_v40  ;;  %v1283_v57 = vsub.f32 %v268_v42, %v674_v41  ;;  %v298_v40 = vpop.permute.xlu0 %297 }
  0xdd   :  { %v176_v44 = vpop.f32.mrb[2].mxu0  ;;  %v678_v45 = vpop.f32.mrb[2].mxu1  ;;  %2026 = vst [vmem:[#allocation5_spill] sm:$0xff] %v1283_v57 }
  0xde   :  { %v178_v46 = vpop.f32.mrb[3].mxu0  ;;  %v680_v47 = vpop.f32.mrb[3].mxu1  ;;  %v1297_v4 = vsub.f32 %v273_v58, %v176_v44  ;;  %v1299_v5 = vsub.f32 %v273_v58, %v678_v45 }
  0xdf   :  { %v1305_v10 = vsub.f32 %v273_v58, %v178_v46  ;;  %v1307_v11 = vsub.f32 %v273_v58, %v680_v47 }
  0xe1   :  { %v182_v48 = vpop.f32.mrb[4].mxu0  ;;  %v684_v49 = vpop.f32.mrb[4].mxu1  ;;  %2028 = vst [vmem:[#allocation7_spill] sm:$0xff] %v1307_v11 }
  0xe2   :  { %v1277_v52 = vsub.f32 %v278_v43, %v182_v48  ;;  %v1279_v53 = vsub.f32 %v278_v43, %v684_v49  ;;  %v184_v54 = vpop.f32.mrb[5].mxu0  ;;  %v686_v55 = vpop.f32.mrb[5].mxu1 }
  0xe3   :  { %v1285_v59 = vsub.f32 %v278_v43, %v184_v54  ;;  %v1287_v60 = vsub.f32 %v278_v43, %v686_v55 }
  0xe4   :  { %v377_v61 = vmin.f32 %v1273_v50, %v1277_v52  ;;  %v799_v62 = vmin.f32 %v1275_v51, %v1279_v53 }
  0xe5   :  { %2027 = vst [vmem:[#allocation6_spill] sm:$0xff] %v1287_v60  ;;  %v398_v0 = vmin.f32 %v1281_v56, %v1285_v59  ;;  %v820_v1 = vmin.f32 %v1283_v57, %v1287_v60  ;;  %v188_v2 = vpop.f32.mrb[6].mxu0  ;;  %v690_v3 = vpop.f32.mrb[6].mxu1 }
  0xe6   :  { %v1301_v6 = vsub.f32 %v283_v63, %v188_v2  ;;  %v1303_v7 = vsub.f32 %v283_v63, %v690_v3  ;;  %v190_v8 = vpop.f32.mrb[7].mxu0  ;;  %v692_v9 = vpop.f32.mrb[7].mxu1 }
  0xe7   :  { %v1309_v12 = vsub.f32 %v283_v63, %v190_v8  ;;  %v1311_v13 = vsub.f32 %v283_v63, %v692_v9 }
  0xe8   :  { %v378_v14 = vmin.f32 %v1297_v4, %v1301_v6  ;;  %v800_v15 = vmin.f32 %v1299_v5, %v1303_v7 }
  0xe9   :  { %2029 = vst [vmem:[#allocation8_spill] sm:$0xff] %v1311_v13  ;;  %v399_v17 = vmin.f32 %v1305_v10, %v1309_v12  ;;  %v821_v18 = vmin.f32 %v1307_v11, %v1311_v13  ;;  %v194_v19 = vpop.f32.mrb[8].mxu0  ;;  %v696_v20 = vpop.f32.mrb[8].mxu1 }
  0xea   :  { %v1321_v21 = vsub.f32 %v288_v16, %v194_v19  ;;  %v1323_v22 = vsub.f32 %v288_v16, %v696_v20  ;;  %v196_v23 = vpop.f32.mrb[9].mxu0  ;;  %v698_v24 = vpop.f32.mrb[9].mxu1 }
  0xeb   :  { %v1325_v25 = vsub.f32 %v288_v16, %v196_v23  ;;  %v1327_v26 = vsub.f32 %v288_v16, %v698_v24 }
  0xec   :  { %v379_v28 = vmin.f32 %v377_v61, %v1321_v21  ;;  %v801_v29 = vmin.f32 %v799_v62, %v1323_v22  ;;  %v303_v61 = vpop.permute.xlu1 %302 }
  0xed   :  { %2030 = vst [vmem:[#allocation9_spill] sm:$0xff] %v1327_v26  ;;  %v400_v30 = vmin.f32 %v398_v0, %v1325_v25  ;;  %v822_v31 = vmin.f32 %v820_v1, %v1327_v26  ;;  %v200_v32 = vpop.f32.mrb[10].mxu0  ;;  %v702_v33 = vpop.f32.mrb[10].mxu1 }
  0xee   :  { %v1333_v34 = vsub.f32 %v293_v27, %v200_v32  ;;  %v1335_v35 = vsub.f32 %v293_v27, %v702_v33  ;;  %v202_v36 = vpop.f32.mrb[11].mxu0  ;;  %v704_v37 = vpop.f32.mrb[11].mxu1 }
  0xef   :  { %v1337_v38 = vsub.f32 %v293_v27, %v202_v36  ;;  %v1339_v39 = vsub.f32 %v293_v27, %v704_v37 }
  0xf0   :  { %v380_v41 = vmin.f32 %v378_v14, %v1333_v34  ;;  %v802_v42 = vmin.f32 %v800_v15, %v1335_v35  ;;  %v313_v37 = vpop.permute.xlu1 %312 }
  0xf1   :  { %2031 = vst [vmem:[#allocation10_spill] sm:$0xff] %v1337_v38  ;;  %2032 = vst [vmem:[#allocation11_spill] sm:$0xff] %v1339_v39  ;;  %v401_v43 = vmin.f32 %v399_v17, %v1337_v38  ;;  %v823_v44 = vmin.f32 %v821_v18, %v1339_v39  ;;  %v206_v45 = vpop.f32.mrb[12].mxu0  ;;  %v708_v46 = vpop.f32.mrb[12].mxu1 }
  0xf2   :  { %v1345_v47 = vsub.f32 %v298_v40, %v206_v45  ;;  %v1347_v48 = vsub.f32 %v298_v40, %v708_v46  ;;  %v208_v49 = vpop.f32.mrb[13].mxu0  ;;  %v710_v54 = vpop.f32.mrb[13].mxu1 }
  0xf3   :  { %v1349_v55 = vsub.f32 %v298_v40, %v208_v49  ;;  %v1351_v58 = vsub.f32 %v298_v40, %v710_v54  ;;  %v308_v18 = vpop.permute.xlu0 %307 }
  0xf4   :  { %v381_v62 = vmin.f32 %v379_v28, %v1345_v47  ;;  %v803_v63 = vmin.f32 %v801_v29, %v1347_v48 }
  0xf5   :  { %2033 = vst [vmem:[#allocation12_spill] sm:$0xff] %v1349_v55  ;;  %2034 = vst [vmem:[#allocation13_spill] sm:$0xff] %v1351_v58  ;;  %v402_v0 = vmin.f32 %v400_v30, %v1349_v55  ;;  %v824_v1 = vmin.f32 %v822_v31, %v1351_v58  ;;  %v212_v2 = vpop.f32.mrb[14].mxu0  ;;  %v714_v3 = vpop.f32.mrb[14].mxu1 }
  0xf6   :  { %v1357_v8 = vsub.f32 %v303_v61, %v212_v2  ;;  %v1359_v9 = vsub.f32 %v303_v61, %v714_v3  ;;  %v214_v14 = vpop.f32.mrb[15].mxu0  ;;  %v716_v15 = vpop.f32.mrb[15].mxu1 }
  0xf7   :  { %v1361_v16 = vsub.f32 %v303_v61, %v214_v14  ;;  %v1363_v17 = vsub.f32 %v303_v61, %v716_v15  ;;  %v318_v14 = vpop.permute.xlu0 %317 }
  0xf8   :  { %v382_v19 = vmin.f32 %v380_v41, %v1357_v8  ;;  %v804_v20 = vmin.f32 %v802_v42, %v1359_v9 }
  0xf9   :  { %2035 = vst [vmem:[#allocation14_spill] sm:$0xff] %v1361_v16  ;;  %2036 = vst [vmem:[#allocation15_spill] sm:$0xff] %v1363_v17  ;;  %v403_v23 = vmin.f32 %v401_v43, %v1361_v16  ;;  %v825_v24 = vmin.f32 %v823_v44, %v1363_v17  ;;  %v218_v27 = vpop.f32.mrb[16].mxu0  ;;  %v720_v28 = vpop.f32.mrb[16].mxu1 }
  0xfa   :  { %v1369_v29 = vsub.f32 %v308_v18, %v218_v27  ;;  %v1371_v30 = vsub.f32 %v308_v18, %v720_v28  ;;  %v220_v31 = vpop.f32.mrb[17].mxu0  ;;  %v722_v32 = vpop.f32.mrb[17].mxu1 }
  0xfb   :  { %v1373_v33 = vsub.f32 %v308_v18, %v220_v31  ;;  %v1375_v36 = vsub.f32 %v308_v18, %v722_v32 }
  0xfc   :  { %v383_v40 = vmin.f32 %v381_v62, %v1369_v29  ;;  %v805_v41 = vmin.f32 %v803_v63, %v1371_v30 }
  0xfd   :  { %2037 = vst [vmem:[#allocation16_spill] sm:$0xff] %v1373_v33  ;;  %2038 = vst [vmem:[#allocation17_spill] sm:$0xff] %v1375_v36  ;;  %v404_v42 = vmin.f32 %v402_v0, %v1373_v33  ;;  %v826_v43 = vmin.f32 %v824_v1, %v1375_v36  ;;  %v224_v44 = vpop.f32.mrb[18].mxu0  ;;  %v726_v45 = vpop.f32.mrb[18].mxu1 }
  0xfe   :  { %v1381_v46 = vsub.f32 %v313_v37, %v224_v44  ;;  %v1383_v49 = vsub.f32 %v313_v37, %v726_v45  ;;  %v226_v54 = vpop.f32.mrb[19].mxu0  ;;  %v728_v61 = vpop.f32.mrb[19].mxu1 }
  0xff   :  { %v1385_v2 = vsub.f32 %v313_v37, %v226_v54  ;;  %v1387_v3 = vsub.f32 %v313_v37, %v728_v61  ;;  %v323_v45 = vpop.permute.xlu1 %322 }
 0x100   :  { %v384_v62 = vmin.f32 %v382_v19, %v1381_v46  ;;  %v806_v63 = vmin.f32 %v804_v20, %v1383_v49 }
 0x101   :  { %2039 = vst [vmem:[#allocation18_spill] sm:$0xff] %v1385_v2  ;;  %2040 = vst [vmem:[#allocation19_spill] sm:$0xff] %v1387_v3  ;;  %v405_v0 = vmin.f32 %v403_v23, %v1385_v2  ;;  %v827_v1 = vmin.f32 %v825_v24, %v1387_v3  ;;  %v230_v15 = vpop.f32.mrb[20].mxu0  ;;  %v732_v18 = vpop.f32.mrb[20].mxu1 }
 0x102   :  { %v1393_v27 = vsub.f32 %v318_v14, %v230_v15  ;;  %v1395_v28 = vsub.f32 %v318_v14, %v732_v18  ;;  %v232_v31 = vpop.f32.mrb[21].mxu0  ;;  %v734_v32 = vpop.f32.mrb[21].mxu1 }
 0x103   :  { %v1397_v44 = vsub.f32 %v318_v14, %v232_v31  ;;  %v1399_v37 = vsub.f32 %v318_v14, %v734_v32  ;;  %v328_v32 = vpop.permute.xlu0 %327 }
 0x104   :  { %v385_v19 = vmin.f32 %v383_v40, %v1393_v27  ;;  %v807_v20 = vmin.f32 %v805_v41, %v1395_v28 }
 0x105   :  { %2041 = vst [vmem:[#allocation20_spill] sm:$0xff] %v1397_v44  ;;  %2042 = vst [vmem:[#allocation21_spill] sm:$0xff] %v1399_v37  ;;  %v406_v23 = vmin.f32 %v404_v42, %v1397_v44  ;;  %v828_v24 = vmin.f32 %v826_v43, %v1399_v37  ;;  %v236_v54 = vpop.f32.mrb[22].mxu0  ;;  %v738_v61 = vpop.f32.mrb[22].mxu1 }
 0x106   :  { %v1405_v15 = vsub.f32 %v323_v45, %v236_v54  ;;  %v1407_v18 = vsub.f32 %v323_v45, %v738_v61  ;;  %v238_v3 = vpop.f32.mrb[23].mxu0  ;;  %v740_v31 = vpop.f32.mrb[23].mxu1 }
 0x107   :  { %v1409_v36 = vsub.f32 %v323_v45, %v238_v3  ;;  %v1411_v14 = vsub.f32 %v323_v45, %v740_v31  ;;  %v333_v31 = vpop.permute.xlu1 %332 }
 0x108   :  { %v386_v40 = vmin.f32 %v384_v62, %v1405_v15  ;;  %v808_v41 = vmin.f32 %v806_v63, %v1407_v18 }
 0x109   :  { %2043 = vst [vmem:[#allocation22_spill] sm:$0xff] %v1409_v36  ;;  %2044 = vst [vmem:[#allocation23_spill] sm:$0xff] %v1411_v14  ;;  %v407_v42 = vmin.f32 %v405_v0, %v1409_v36  ;;  %v829_v43 = vmin.f32 %v827_v1, %v1411_v14  ;;  %v242_v37 = vpop.f32.mrb[24].mxu0  ;;  %v744_v54 = vpop.f32.mrb[24].mxu1 }
 0x10a   :  { %v1417_v17 = vsub.f32 %v328_v32, %v242_v37  ;;  %v1419_v61 = vsub.f32 %v328_v32, %v744_v54  ;;  %v244_v58 = vpop.f32.mrb[25].mxu0  ;;  %v746_v3 = vpop.f32.mrb[25].mxu1 }
 0x10b   :  { %v1421_v39 = vsub.f32 %v328_v32, %v244_v58  ;;  %v1423_v45 = vsub.f32 %v328_v32, %v746_v3  ;;  %v338_v3 = vpop.permute.xlu0 %337 }
 0x10c   :  { %v387_v62 = vmin.f32 %v385_v19, %v1417_v17  ;;  %v809_v63 = vmin.f32 %v807_v20, %v1419_v61 }
 0x10d   :  { %2045 = vst [vmem:[#allocation24_spill] sm:$0xff] %v1421_v39  ;;  %2046 = vst [vmem:[#allocation25_spill] sm:$0xff] %v1423_v45  ;;  %v408_v0 = vmin.f32 %v406_v23, %v1421_v39  ;;  %v830_v1 = vmin.f32 %v828_v24, %v1423_v45  ;;  %v248_v14 = vpop.f32.mrb[26].mxu0  ;;  %v750_v37 = vpop.f32.mrb[26].mxu1 }
 0x10e   :  { %v1429_v26 = vsub.f32 %v333_v31, %v248_v14  ;;  %v1431_v54 = vsub.f32 %v333_v31, %v750_v37  ;;  %v250_v13 = vpop.f32.mrb[27].mxu0  ;;  %v752_v58 = vpop.f32.mrb[27].mxu1 }
 0x10f   :  { %v1433_v60 = vsub.f32 %v333_v31, %v250_v13  ;;  %v1435_v32 = vsub.f32 %v333_v31, %v752_v58  ;;  %v343_v58 = vpop.permute.xlu1 %342 }
 0x110   :  { %v388_v19 = vmin.f32 %v386_v40, %v1429_v26  ;;  %v810_v20 = vmin.f32 %v808_v41, %v1431_v54 }
 0x111   :  { %2047 = vst [vmem:[#allocation26_spill] sm:$0xff] %v1433_v60  ;;  %2048 = vst [vmem:[#allocation27_spill] sm:$0xff] %v1435_v32  ;;  %v409_v23 = vmin.f32 %v407_v42, %v1433_v60  ;;  %v831_v24 = vmin.f32 %v829_v43, %v1435_v32  ;;  %v254_v45 = vpop.f32.mrb[28].mxu0  ;;  %v756_v14 = vpop.f32.mrb[28].mxu1 }
 0x112   :  { %v1441_v11 = vsub.f32 %v338_v3, %v254_v45  ;;  %v1443_v37 = vsub.f32 %v338_v3, %v756_v14  ;;  %v256_v57 = vpop.f32.mrb[29].mxu0  ;;  %v758_v13 = vpop.f32.mrb[29].mxu1 }
 0x113   :  { %v1445_v39 = vsub.f32 %v338_v3, %v256_v57  ;;  %v1447_v31 = vsub.f32 %v338_v3, %v758_v13 }
 0x114   :  { %v389_v40 = vmin.f32 %v387_v62, %v1441_v11  ;;  %v811_v41 = vmin.f32 %v809_v63, %v1443_v37 }
 0x115   :  { %2049 = vst [vmem:[#allocation28_spill] sm:$0xff] %v1445_v39  ;;  %2050 = vst [vmem:[#allocation29_spill] sm:$0xff] %v1447_v31  ;;  %v410_v42 = vmin.f32 %v408_v0, %v1445_v39  ;;  %v832_v43 = vmin.f32 %v830_v1, %v1447_v31  ;;  %v260_v32 = vpop.f32.mrb[30].mxu0  ;;  %v762_v45 = vpop.f32.mrb[30].mxu1  ;;  %v2023_v31 = vlaneseq }
 0x116   :  { %v1453_v60 = vsub.f32 %v343_v58, %v260_v32  ;;  %v1455_v14 = vsub.f32 %v343_v58, %v762_v45  ;;  %v262_v36 = vpop.f32.mrb[31].mxu0  ;;  %v764_v57 = vpop.f32.mrb[31].mxu1 }
 0x117   :  { %v1457_v44 = vsub.f32 %v343_v58, %v262_v36  ;;  %v1459_v3 = vsub.f32 %v343_v58, %v764_v57  ;;  %v1466_v58 = vshrl.u32 %v2023_v31, 7 }
 0x118   :  { %v390_v62 = vmin.f32 %v388_v19, %v1453_v60  ;;  %v812_v63 = vmin.f32 %v810_v20, %v1455_v14 }
 0x119   :  { %2051 = vst [vmem:[#allocation30_spill] sm:$0xff] %v1457_v44  ;;  %2052 = vst [vmem:[#allocation31_spill] sm:$0xff] %v1459_v3  ;;  %v411_v0 = vmin.f32 %v409_v23, %v1457_v44  ;;  %v833_v1 = vmin.f32 %v831_v24, %v1459_v3 }
 0x11a   :  { %v391_v13 = vmin.f32 %v389_v40, %v390_v62  ;;  %v813_v32 = vmin.f32 %v811_v41, %v812_v63  ;;  %v1469_v40 = vadd.s32 8, %v1466_v58  ;;  %v1472_v41 = vadd.s32 16, %v1466_v58 }
 0x11b   :  { %v412_v39 = vmin.f32 %v410_v42, %v411_v0  ;;  %v834_v45 = vmin.f32 %v832_v43, %v833_v1  ;;  %v1475_v42 = vadd.s32 24, %v1466_v58  ;;  %v1481_v62 = vadd.s32 40, %v1466_v58 }
 0x11c   :  { %v392_v2 = vrot.slane %v391_v13, 4  ;;  %v814_v33 = vrot.slane %v813_v32, 4  ;;  %v1490_v63 = vadd.s32 64, %v1466_v58  ;;  %v1493_v0 = vadd.s32 72, %v1466_v58 }
 0x11d   :  { %v413_v16 = vrot.slane %v412_v39, 4  ;;  %v835_v36 = vrot.slane %v834_v45, 4  ;;  %v1496_v1 = vadd.s32 80, %v1466_v58 }
 0x11e   :  { %v393_v55 = vmin.f32 %v391_v13, %v392_v2  ;;  %v815_v19 = vmin.f32 %v813_v32, %v814_v33  ;;  %v1478_v2 = vadd.s32 32, %v1466_v58  ;;  %v1504_v32 = vadd.s32 96, %v1466_v58 }
 0x11f   :  { %v414_v57 = vmin.f32 %v412_v39, %v413_v16  ;;  %v836_v20 = vmin.f32 %v834_v45, %v835_v36  ;;  %v1507_v45 = vadd.s32 104, %v1466_v58  ;;  %v1510_v36 = vadd.s32 112, %v1466_v58 }
 0x120   :  { %v394_v38 = vrot.slane %v393_v55, 2  ;;  %v816_v23 = vrot.slane %v815_v19, 2 }
 0x121   :  { %v415_v44 = vrot.slane %v414_v57, 2  ;;  %v837_v39 = vrot.slane %v836_v20, 2 }
 0x122   :  { %v395_v24 = vmin.f32 %v393_v55, %v394_v38  ;;  %v817_v43 = vmin.f32 %v815_v19, %v816_v23  ;;  %v1484_v38 = vadd.s32 48, %v1466_v58  ;;  %v1487_v55 = vadd.s32 56, %v1466_v58 }
 0x123   :  { %v416_v33 = vmin.f32 %v414_v57, %v415_v44  ;;  %v1499_v44 = vadd.s32 88, %v1466_v58  ;;  %v1513_v19 = vadd.s32 120, %v1466_v58  ;;  %v1515_v31 = vmin.f32 %v836_v20, %v837_v39 }
 0x124   :  { %v396_v16 = vrot.slane %v395_v24, 1  ;;  %v818_v57 = vrot.slane %v817_v43, 1 }
 0x125   :  { %v417_v23 = vrot.slane %v416_v33, 1  ;;  %v839_v39 = vrot.slane %v1515_v31, 1 }
 0x126   :  { %v1501_v13 = vmin.f32 %v395_v24, %v396_v16  ;;  %v1549_v20 = vmin.f32 %v817_v43, %v818_v57 }
 0x127   :  { %v1551_v24 = vmin.f32 %v416_v33, %v417_v23 }
 0x128   :  { %vm436_vm2 = vcmp.le.f32.partialorder %v1273_v50, %v1501_v13  ;;  %vm438_vm3 = vcmp.le.f32.partialorder %v1297_v4, %v1501_v13  ;;  %vm440_vm4 = vcmp.le.f32.partialorder %v1277_v52, %v1501_v13  ;;  %vm442_vm5 = vcmp.le.f32.partialorder %v1301_v6, %v1501_v13 }
 0x129   :  { %vm444_vm6 = vcmp.le.f32.partialorder %v1321_v21, %v1501_v13  ;;  %vm446_vm7 = vcmp.le.f32.partialorder %v1333_v34, %v1501_v13  ;;  %vm448_vm8 = vcmp.le.f32.partialorder %v1345_v47, %v1501_v13  ;;  %vm450_vm9 = vcmp.le.f32.partialorder %v1357_v8, %v1501_v13 }
 0x12a   :  { %vm452_vm10 = vcmp.le.f32.partialorder %v1369_v29, %v1501_v13  ;;  %vm454_vm11 = vcmp.le.f32.partialorder %v1381_v46, %v1501_v13  ;;  %vm456_vm12 = vcmp.le.f32.partialorder %v1393_v27, %v1501_v13  ;;  %vm458_vm13 = vcmp.le.f32.partialorder %v1405_v15, %v1501_v13 }
 0x12b   :  { %vm460_vm14 = vcmp.le.f32.partialorder %v1417_v17, %v1501_v13  ;;  %vm462_vm15 = vcmp.le.f32.partialorder %v1429_v26, %v1501_v13  ;;  %vm464_vm0 = vcmp.le.f32.partialorder %v1441_v11, %v1501_v13  ;;  %vm466_vm1 = vcmp.le.f32.partialorder %v1453_v60, %v1501_v13 }
 0x12c   :  { %v468_v16 = vsel %vm436_vm2, %v1466_v58, 128  ;;  %v470_v3 = vsel %vm438_vm3, %v1469_v40, 128  ;;  %v472_v43 = vsel %vm440_vm4, %v1472_v41, 128  ;;  %v474_v33 = vsel %vm442_vm5, %v1475_v42, 128 }
 0x12d   :  { %v476_v50 = vsel %vm444_vm6, %v1478_v2, 128  ;;  %v478_v4 = vsel %vm446_vm7, %v1481_v62, 128  ;;  %v480_v52 = vsel %vm448_vm8, %v1484_v38, 128  ;;  %v482_v6 = vsel %vm450_vm9, %v1487_v55, 128 }
 0x12e   :  { %v484_v21 = vsel %vm452_vm10, %v1490_v63, 128  ;;  %v486_v34 = vsel %vm454_vm11, %v1493_v0, 128  ;;  %v488_v47 = vsel %vm456_vm12, %v1496_v1, 128  ;;  %v490_v8 = vsel %vm458_vm13, %v1499_v44, 128 }
 0x12f   :  { %vm500_vm2 = vcmp.lt.s32.totalorder %v468_v16, %v472_v43  ;;  %vm502_vm3 = vcmp.lt.s32.totalorder %v470_v3, %v474_v33  ;;  %vm841_vm4 = vcmp.le.f32.partialorder %v1275_v51, %v1549_v20  ;;  %vm843_vm5 = vcmp.le.f32.partialorder %v1299_v5, %v1549_v20 }
 0x130   :  { %v501_v29 = vsel %vm500_vm2, %v468_v16, %v472_v43  ;;  %v503_v46 = vsel %vm502_vm3, %v470_v3, %v474_v33  ;;  %vm857_vm7 = vcmp.le.f32.partialorder %v1371_v30, %v1549_v20  ;;  %vm859_vm6 = vcmp.le.f32.partialorder %v1383_v49, %v1549_v20 }
 0x131   :  { %vm504_vm8 = vcmp.lt.s32.totalorder %v501_v29, %v476_v50  ;;  %vm506_vm9 = vcmp.lt.s32.totalorder %v503_v46, %v478_v4  ;;  %v492_v43 = vsel %vm460_vm14, %v1504_v32, 128  ;;  %v494_v33 = vsel %vm462_vm15, %v1507_v45, 128 }
 0x132   :  { %v505_v27 = vsel %vm504_vm8, %v501_v29, %v476_v50  ;;  %v507_v15 = vsel %vm506_vm9, %v503_v46, %v478_v4  ;;  %vm861_vm8 = vcmp.le.f32.partialorder %v1395_v28, %v1549_v20  ;;  %vm863_vm9 = vcmp.le.f32.partialorder %v1407_v18, %v1549_v20 }
 0x133   :  { %vm508_vm2 = vcmp.lt.s32.totalorder %v505_v27, %v480_v52  ;;  %vm510_vm3 = vcmp.lt.s32.totalorder %v507_v15, %v482_v6  ;;  %v496_v50 = vsel %vm464_vm0, %v1510_v36, 128  ;;  %v498_v4 = vsel %vm466_vm1, %v1513_v19, 128 }
 0x134   :  { %v509_v3 = vsel %vm508_vm2, %v505_v27, %v480_v52  ;;  %v511_v57 = vsel %vm510_vm3, %v507_v15, %v482_v6  ;;  %vm869_vm2 = vcmp.le.f32.partialorder %v1443_v37, %v1549_v20  ;;  %vm871_vm3 = vcmp.le.f32.partialorder %v1455_v14, %v1549_v20  ;;  %v2069_v14 = vld [vmem:[#allocation22_spill] sm:$0xff] }
 0x135   :  { %vm512_vm12 = vcmp.lt.s32.totalorder %v509_v3, %v484_v21  ;;  %vm514_vm11 = vcmp.lt.s32.totalorder %v511_v57, %v486_v34  ;;  %v873_v26 = vsel %vm841_vm4, %v1466_v58, 128  ;;  %v875_v11 = vsel %vm843_vm5, %v1469_v40, 128 }
 0x136   :  { %v513_v23 = vsel %vm512_vm12, %v509_v3, %v484_v21  ;;  %v515_v16 = vsel %vm514_vm11, %v511_v57, %v486_v34  ;;  %vm2053_vm15 = vcmp.le.f32.partialorder %v1279_v53, %v1549_v20  ;;  %vm2054_vm0 = vcmp.le.f32.partialorder %v1303_v7, %v1549_v20  ;;  %v2062_v57 = vld [vmem:[#allocation12_spill] sm:$0xff] }
 0x137   :  { %vm516_vm13 = vcmp.lt.s32.totalorder %v513_v23, %v488_v47  ;;  %vm518_vm10 = vcmp.lt.s32.totalorder %v515_v16, %v490_v8  ;;  %v877_v60 = vsel %vm2053_vm15, %v1472_v41, 128  ;;  %v879_v13 = vsel %vm2054_vm0, %v1475_v42, 128 }
 0x138   :  { %v517_v52 = vsel %vm516_vm13, %v513_v23, %v488_v47  ;;  %v519_v17 = vsel %vm518_vm10, %v515_v16, %v490_v8  ;;  %vm2055_vm4 = vcmp.le.f32.partialorder %v1323_v22, %v1549_v20  ;;  %vm2056_vm5 = vcmp.le.f32.partialorder %v1335_v35, %v1549_v20  ;;  %v2063_v23 = vld [vmem:[#allocation14_spill] sm:$0xff] }
 0x139   :  { %vm520_vm14 = vcmp.lt.s32.totalorder %v517_v52, %v492_v43  ;;  %vm522_vm11 = vcmp.lt.s32.totalorder %v519_v17, %v494_v33  ;;  %v881_v51 = vsel %vm2055_vm4, %v1478_v2, 128  ;;  %v883_v5 = vsel %vm2056_vm5, %v1481_v62, 128 }
 0x13a   :  { %v521_v6 = vsel %vm520_vm14, %v517_v52, %v492_v43  ;;  %v523_v21 = vsel %vm522_vm11, %v519_v17, %v494_v33  ;;  %vm2057_vm12 = vcmp.le.f32.partialorder %v1347_v48, %v1549_v20  ;;  %vm2058_vm13 = vcmp.le.f32.partialorder %v1359_v9, %v1549_v20  ;;  %v2064_v33 = vld [vmem:[#allocation16_spill] sm:$0xff] }
 0x13b   :  { %vm524_vm1 = vcmp.lt.s32.totalorder %v521_v6, %v496_v50  ;;  %vm526_vm10 = vcmp.lt.s32.totalorder %v523_v21, %v498_v4  ;;  %v885_v7 = vsel %vm2057_vm12, %v1484_v38, 128  ;;  %v887_v47 = vsel %vm2058_vm13, %v1487_v55, 128 }
 0x13c   :  { %v525_v34 = vsel %vm524_vm1, %v521_v6, %v496_v50  ;;  %v527_v53 = vsel %vm526_vm10, %v523_v21, %v498_v4  ;;  %v889_v22 = vsel %vm857_vm7, %v1490_v63, 128  ;;  %v891_v35 = vsel %vm859_vm6, %v1493_v0, 128  ;;  %v2067_v4 = vld [vmem:[#allocation18_spill] sm:$0xff] }
 0x13d   :  { %vm528_vm14 = vcmp.lt.s32.totalorder %v525_v34, %v527_v53  ;;  %v893_v48 = vsel %vm861_vm8, %v1496_v1, 128  ;;  %v895_v9 = vsel %vm863_vm9, %v1499_v44, 128  ;;  %vm905_vm11 = vcmp.lt.s32.totalorder %v873_v26, %v877_v60 }
 0x13e   :  { %v529_v8 = vsel %vm528_vm14, %v525_v34, %v527_v53  ;;  %vm907_vm15 = vcmp.lt.s32.totalorder %v875_v11, %v879_v13  ;;  %vm2059_vm7 = vcmp.le.f32.partialorder %v1419_v61, %v1549_v20  ;;  %v906_v49 = vsel %vm905_vm11, %v873_v26, %v877_v60  ;;  %v2068_v26 = vld [vmem:[#allocation20_spill] sm:$0xff] }
 0x13f   :  { %v897_v30 = vsel %vm2059_vm7, %v1504_v32, 128  ;;  %v908_v29 = vsel %vm907_vm15, %v875_v11, %v879_v13  ;;  %vm437_vm6 = vcmp.le.f32.partialorder %v1281_v56, %v1551_v24  ;;  %vm909_vm0 = vcmp.lt.s32.totalorder %v906_v49, %v881_v51  ;;  %v2071_v11 = vld [vmem:[#allocation26_spill] sm:$0xff]  ;;  %v2072_v60 = vld [vmem:[#allocation28_spill] sm:$0xff] }
 0x140   :  { %vm911_vm8 = vcmp.lt.s32.totalorder %v908_v29, %v883_v5  ;;  %vm439_vm1 = vcmp.le.f32.partialorder %v1305_v10, %v1551_v24  ;;  %vm441_vm9 = vcmp.le.f32.partialorder %v1285_v59, %v1551_v24  ;;  %vm2060_vm10 = vcmp.le.f32.partialorder %v1431_v54, %v1549_v20  ;;  %v2061_v54 = vld [vmem:[#allocation10_spill] sm:$0xff]  ;;  %v2070_v20 = vld [vmem:[#allocation24_spill] sm:$0xff] }
 0x141   :  { %v899_v28 = vsel %vm2060_vm10, %v1507_v45, 128  ;;  %v910_v18 = vsel %vm909_vm0, %v906_v49, %v881_v51  ;;  %v912_v61 = vsel %vm911_vm8, %v908_v29, %v883_v5  ;;  %vm443_vm4 = vcmp.le.f32.partialorder %v1309_v12, %v1551_v24  ;;  %v2073_v13 = vld [vmem:[#allocation30_spill] sm:$0xff] }
 0x142   :  { %v530_v46 = vrot.slane %v529_v8, 4  ;;  %vm913_vm5 = vcmp.lt.s32.totalorder %v910_v18, %v885_v7  ;;  %vm915_vm12 = vcmp.lt.s32.totalorder %v912_v61, %v887_v47  ;;  %vm445_vm13 = vcmp.le.f32.partialorder %v1325_v25, %v1551_v24 }
 0x143   :  { %v901_v27 = vsel %vm869_vm2, %v1510_v36, 128  ;;  %v914_v15 = vsel %vm913_vm5, %v910_v18, %v885_v7  ;;  %v916_v3 = vsel %vm915_vm12, %v912_v61, %v887_v47  ;;  %vm447_vm14 = vcmp.le.f32.partialorder %v2061_v54, %v1551_v24 }
 0x144   :  { %vm917_vm11 = vcmp.lt.s32.totalorder %v914_v15, %v889_v22  ;;  %vm919_vm15 = vcmp.lt.s32.totalorder %v916_v3, %v891_v35  ;;  %v903_v16 = vsel %vm871_vm3, %v1513_v19, 128  ;;  %vm1732_vm8 = vcmp.lt.s32.totalorder %v529_v8, %v530_v46 }
 0x145   :  { %v918_v37 = vsel %vm917_vm11, %v914_v15, %v889_v22  ;;  %v920_v43 = vsel %vm919_vm15, %v916_v3, %v891_v35  ;;  %vm455_vm12 = vcmp.le.f32.partialorder %v2067_v4, %v1551_v24  ;;  %vm461_vm2 = vcmp.le.f32.partialorder %v2070_v20, %v1551_v24  ;;  %v2081_v3 = vld [vmem:[#allocation6_spill] sm:$0xff]  ;;  %v2086_v4 = vld [vmem:[#allocation13_spill] sm:$0xff]  ;;  %v2089_v20 = vld [vmem:[#allocation19_spill] sm:$0xff] }
 0x146   :  { %vm921_vm10 = vcmp.lt.s32.totalorder %v918_v37, %v893_v48  ;;  %vm923_vm5 = vcmp.lt.s32.totalorder %v920_v43, %v895_v9  ;;  %v1752_v51 = vsel %vm1732_vm8, %v529_v8, %v530_v46  ;;  %v1085_v53 = vmov 1966171168   ;;  %v2080_v46 = vld [vmem:[#allocation7_spill] sm:$0xff] }
 0x147   :  { %v922_v52 = vsel %vm921_vm10, %v918_v37, %v893_v48  ;;  %v924_v17 = vsel %vm923_vm5, %v920_v43, %v895_v9  ;;  %vm465_vm10 = vcmp.le.f32.partialorder %v2072_v60, %v1551_v24  ;;  %vm467_vm5 = vcmp.le.f32.partialorder %v2073_v13, %v1551_v24  ;;  %v2085_v43 = vld [vmem:[#allocation11_spill] sm:$0xff]  ;;  %v2092_v60 = vld [vmem:[#allocation25_spill] sm:$0xff] }
 0x148   :  { %vm925_vm11 = vcmp.lt.s32.totalorder %v922_v52, %v897_v30  ;;  %vm927_vm15 = vcmp.lt.s32.totalorder %v924_v17, %v899_v28  ;;  %v1754_v7 = vunpack.c.l.s4 %v1085_v53  ;;  %v469_v47 = vsel %vm437_vm6, %v1466_v58, 128  ;;  %v2094_v53 = vld [vmem:[#allocation29_spill] sm:$0xff] }
 0x149   :  { %v926_v6 = vsel %vm925_vm11, %v922_v52, %v897_v30  ;;  %v928_v21 = vsel %vm927_vm15, %v924_v17, %v899_v28  ;;  %v473_v22 = vsel %vm441_vm9, %v1472_v41, 128  ;;  %v1767_v35 = vmin.f32 %v1515_v31, %v839_v39  ;;  %v2078_v28 = vld [vmem:[#allocation5_spill] sm:$0xff]  ;;  %v2087_v17 = vld [vmem:[#allocation15_spill] sm:$0xff] }
 0x14a   :  { %vm929_vm3 = vcmp.lt.s32.totalorder %v926_v6, %v901_v27  ;;  %vm931_vm0 = vcmp.lt.s32.totalorder %v928_v21, %v903_v16  ;;  %v533_v48 = vrot.slane %v1752_v51, 2  ;;  %v471_v56 = vsel %vm439_vm1, %v1469_v40, 128 }
 0x14b   :  { %v930_v5 = vsel %vm929_vm3, %v926_v6, %v901_v27  ;;  %v932_v34 = vsel %vm931_vm0, %v928_v21, %v903_v16  ;;  %v475_v59 = vsel %vm443_vm4, %v1475_v42, 128  ;;  %v477_v31 = vsel %vm445_vm13, %v1478_v2, 128  ;;  %v2091_v21 = vld [vmem:[#allocation23_spill] sm:$0xff] }
 0x14c   :  { %vm933_vm7 = vcmp.lt.s32.totalorder %v930_v5, %v932_v34  ;;  %v479_v39 = vsel %vm447_vm14, %v1481_v62, 128  ;;  %vm2074_vm6 = vcmp.le.f32.partialorder %v2062_v57, %v1551_v24  ;;  %vm2075_vm1 = vcmp.le.f32.partialorder %v2063_v23, %v1551_v24  ;;  %v2082_v57 = vld [vmem:[#allocation8_spill] sm:$0xff]  ;;  %v2083_v23 = vld [vmem:[#allocation9_spill] sm:$0xff] }
 0x14d   :  { %v1770_v8 = vsel %vm933_vm7, %v930_v5, %v932_v34  ;;  %v481_v10 = vsel %vm2074_vm6, %v1484_v38, 128  ;;  %v483_v12 = vsel %vm2075_vm1, %v1487_v55, 128  ;;  %vm2076_vm9 = vcmp.le.f32.partialorder %v2064_v33, %v1551_v24  ;;  %v2093_v34 = vld [vmem:[#allocation27_spill] sm:$0xff] }
 0x14e   :  { %v935_v9 = vrot.slane %v1770_v8, 4  ;;  %v485_v25 = vsel %vm2076_vm9, %v1490_v63, 128  ;;  %v487_v30 = vsel %vm455_vm12, %v1493_v0, 128  ;;  %vm539_vm4 = vcmp.lt.s32.totalorder %v469_v47, %v473_v22 }
 0x14f   :  { %vm2077_vm13 = vcmp.le.f32.partialorder %v2068_v26, %v1551_v24  ;;  %v540_v29 = vsel %vm539_vm4, %v469_v47, %v473_v22  ;;  %vm541_vm14 = vcmp.lt.s32.totalorder %v471_v56, %v475_v59  ;;  %vm842_vm7 = vcmp.le.f32.partialorder %v2078_v28, %v1767_v35  ;;  %v2088_v26 = vld [vmem:[#allocation17_spill] sm:$0xff]  ;;  %v2095_v22 = vld [vmem:[#allocation31_spill] sm:$0xff] }
 0x150   :  { %v489_v49 = vsel %vm2077_vm13, %v1496_v1, 128  ;;  %vm2079_vm0 = vcmp.le.f32.partialorder %v2069_v14, %v1551_v24  ;;  %v542_v61 = vsel %vm541_vm14, %v471_v56, %v475_v59  ;;  %vm543_vm8 = vcmp.lt.s32.totalorder %v540_v29, %v477_v31 }
 0x151   :  { %v491_v18 = vsel %vm2079_vm0, %v1499_v44, 128  ;;  %vm844_vm12 = vcmp.le.f32.partialorder %v2080_v46, %v1767_v35  ;;  %v493_v27 = vsel %vm461_vm2, %v1504_v32, 128  ;;  %v544_v15 = vsel %vm543_vm8, %v540_v29, %v477_v31 }
 0x152   :  { %vm545_vm3 = vcmp.lt.s32.totalorder %v542_v61, %v479_v39  ;;  %vm846_vm11 = vcmp.le.f32.partialorder %v2081_v3, %v1767_v35  ;;  %vm547_vm15 = vcmp.lt.s32.totalorder %v544_v15, %v481_v10  ;;  %vm848_vm6 = vcmp.le.f32.partialorder %v2082_v57, %v1767_v35 }
 0x153   :  { %v546_v54 = vsel %vm545_vm3, %v542_v61, %v479_v39  ;;  %vm850_vm1 = vcmp.le.f32.partialorder %v2083_v23, %v1767_v35  ;;  %vm2084_vm9 = vcmp.le.f32.partialorder %v2071_v11, %v1551_v24  ;;  %v548_v37 = vsel %vm547_vm15, %v544_v15, %v481_v10  ;;  %v2090_v11 = vld [vmem:[#allocation21_spill] sm:$0xff] }
 0x154   :  { %v495_v16 = vsel %vm2084_vm9, %v1507_v45, 128  ;;  %vm549_vm2 = vcmp.lt.s32.totalorder %v546_v54, %v483_v12  ;;  %vm852_vm4 = vcmp.le.f32.partialorder %v2085_v43, %v1767_v35  ;;  %v497_v33 = vsel %vm465_vm10, %v1510_v36, 128 }
 0x155   :  { %v550_v50 = vsel %vm549_vm2, %v546_v54, %v483_v12  ;;  %vm551_vm13 = vcmp.lt.s32.totalorder %v548_v37, %v485_v25  ;;  %vm866_vm14 = vcmp.le.f32.partialorder %v2092_v60, %v1767_v35  ;;  %vm936_vm9 = vcmp.lt.s32.totalorder %v1770_v8, %v935_v9 }
 0x156   :  { %v552_v52 = vsel %vm551_vm13, %v548_v37, %v485_v25  ;;  %vm553_vm0 = vcmp.lt.s32.totalorder %v550_v50, %v487_v30  ;;  %vm864_vm13 = vcmp.le.f32.partialorder %v2091_v21, %v1767_v35  ;;  %v499_v56 = vsel %vm467_vm5, %v1513_v19, 128 }
 0x157   :  { %v554_v14 = vsel %vm553_vm0, %v550_v50, %v487_v30  ;;  %vm555_vm15 = vcmp.lt.s32.totalorder %v552_v52, %v489_v49  ;;  %vm534_vm0 = vcmp.lt.s32.totalorder %v1752_v51, %v533_v48  ;;  %v581_v39 = vunpack.c.0.s8 %v1754_v7 }
 0x158   :  { %v556_v6 = vsel %vm555_vm15, %v552_v52, %v489_v49  ;;  %vm557_vm2 = vcmp.lt.s32.totalorder %v554_v14, %v491_v18  ;;  %vm872_vm15 = vcmp.le.f32.partialorder %v2095_v22, %v1767_v35  ;;  %v1867_v10 = vsel %vm936_vm9, %v1770_v8, %v935_v9 }
 0x159   :  { %v558_v5 = vsel %vm557_vm2, %v554_v14, %v491_v18  ;;  %vm559_vm8 = vcmp.lt.s32.totalorder %v556_v6, %v493_v27  ;;  %v874_v24 = vsel %vm842_vm7, %v1466_v58, 128  ;;  %v878_v13 = vsel %vm846_vm11, %v1472_v41, 128 }
 0x15a   :  { %v560_v47 = vsel %vm559_vm8, %v556_v6, %v493_v27  ;;  %vm561_vm10 = vcmp.lt.s32.totalorder %v558_v5, %v495_v16  ;;  %v876_v7 = vsel %vm844_vm12, %v1469_v40, 128  ;;  %v880_v8 = vsel %vm848_vm6, %v1475_v42, 128 }
 0x15b   :  { %v562_v59 = vsel %vm561_vm10, %v558_v5, %v495_v16  ;;  %vm563_vm2 = vcmp.lt.s32.totalorder %v560_v47, %v497_v33  ;;  %v535_v9 = vsel %vm534_vm0, %v1752_v51, %v533_v48  ;;  %v938_v30 = vrot.slane %v1867_v10, 2 }
 0x15c   :  { %v564_v31 = vsel %vm563_vm2, %v560_v47, %v497_v33  ;;  %vm565_vm3 = vcmp.lt.s32.totalorder %v562_v59, %v499_v56  ;;  %vm944_vm7 = vcmp.lt.s32.totalorder %v874_v24, %v878_v13  ;;  %v1890_v41 = vsub.s32 %v581_v39, %v1466_v58 }
 0x15d   :  { %v566_v12 = vsel %vm565_vm3, %v562_v59, %v499_v56  ;;  %v882_v40 = vsel %vm850_vm1, %v1478_v2, 128  ;;  %v884_v42 = vsel %vm852_vm4, %v1481_v62, 128  ;;  %v945_v29 = vsel %vm944_vm7, %v874_v24, %v878_v13 }
 0x15e   :  { %vm567_vm5 = vcmp.lt.s32.totalorder %v564_v31, %v566_v12  ;;  %vm946_vm12 = vcmp.lt.s32.totalorder %v876_v7, %v880_v8  ;;  %vm948_vm6 = vcmp.lt.s32.totalorder %v945_v29, %v882_v40  ;;  %v536_v48 = vrot.slane %v535_v9, 1 }
 0x15f   :  { %v568_v25 = vsel %vm567_vm5, %v564_v31, %v566_v12  ;;  %v947_v51 = vsel %vm946_vm12, %v876_v7, %v880_v8  ;;  %vm2096_vm8 = vcmp.le.f32.partialorder %v2086_v4, %v1767_v35  ;;  %v949_v18 = vsel %vm948_vm6, %v945_v29, %v882_v40 }
 0x160   :  { %v569_v49 = vrot.slane %v568_v25, 4  ;;  %v886_v58 = vsel %vm2096_vm8, %v1484_v38, 128  ;;  %vm950_vm3 = vcmp.lt.s32.totalorder %v947_v51, %v884_v42  ;;  %vm2097_vm1 = vcmp.le.f32.partialorder %v2087_v17, %v1767_v35 }
 0x161   :  { %v888_v62 = vsel %vm2097_vm1, %v1487_v55, 128  ;;  %v951_v61 = vsel %vm950_vm3, %v947_v51, %v884_v42  ;;  %vm952_vm4 = vcmp.lt.s32.totalorder %v949_v18, %v886_v58  ;;  %vm2098_vm9 = vcmp.le.f32.partialorder %v2088_v26, %v1767_v35 }
 0x162   :  { %vm570_vm11 = vcmp.lt.s32.totalorder %v568_v25, %v569_v49  ;;  %v890_v46 = vsel %vm2098_vm9, %v1490_v63, 128  ;;  %vm2099_vm10 = vcmp.le.f32.partialorder %v2089_v20, %v1767_v35  ;;  %v953_v27 = vsel %vm952_vm4, %v949_v18, %v886_v58 }
 0x163   :  { %v571_v28 = vsel %vm570_vm11, %v568_v25, %v569_v49  ;;  %v892_v38 = vsel %vm2099_vm10, %v1493_v0, 128  ;;  %vm954_vm0 = vcmp.lt.s32.totalorder %v951_v61, %v888_v62  ;;  %vm956_vm5 = vcmp.lt.s32.totalorder %v953_v27, %v890_v46 }
 0x164   :  { %v572_v2 = vrot.slane %v571_v28, 2  ;;  %v955_v15 = vsel %vm954_vm0, %v951_v61, %v888_v62  ;;  %vm537_vm7 = vcmp.lt.s32.totalorder %v535_v9, %v536_v48  ;;  %vm2100_vm12 = vcmp.le.f32.partialorder %v2090_v11, %v1767_v35 }
 0x165   :  { %v894_v55 = vsel %vm2100_vm12, %v1496_v1, 128  ;;  %v957_v54 = vsel %vm956_vm5, %v953_v27, %v890_v46  ;;  %vm958_vm11 = vcmp.lt.s32.totalorder %v955_v15, %v892_v38  ;;  %v896_v63 = vsel %vm864_vm13, %v1499_v44, 128 }
 0x166   :  { %vm573_vm2 = vcmp.lt.s32.totalorder %v571_v28, %v572_v2  ;;  %v959_v0 = vsel %vm958_vm11, %v955_v15, %v892_v38  ;;  %vm960_vm6 = vcmp.lt.s32.totalorder %v957_v54, %v894_v55  ;;  %v898_v23 = vsel %vm866_vm14, %v1504_v32, 128 }
 0x167   :  { %v574_v3 = vsel %vm573_vm2, %v571_v28, %v572_v2  ;;  %v961_v16 = vsel %vm960_vm6, %v957_v54, %v894_v55  ;;  %vm962_vm8 = vcmp.lt.s32.totalorder %v959_v0, %v896_v63  ;;  %v538_v37 = vsel %vm537_vm7, %v535_v9, %v536_v48 }
 0x168   :  { %v575_v57 = vrot.slane %v574_v3, 1  ;;  %vm2101_vm3 = vcmp.le.f32.partialorder %v2093_v34, %v1767_v35  ;;  %v963_v43 = vsel %vm962_vm8, %v959_v0, %v896_v63  ;;  %vm964_vm1 = vcmp.lt.s32.totalorder %v961_v16, %v898_v23 }
 0x169   :  { %v900_v1 = vsel %vm2101_vm3, %v1507_v45, 128  ;;  %vm2102_vm13 = vcmp.le.f32.partialorder %v2094_v53, %v1767_v35  ;;  %v965_v33 = vsel %vm964_vm1, %v961_v16, %v898_v23  ;;  %v904_v32 = vsel %vm872_vm15, %v1513_v19, 128 }
 0x16a   :  { %vm576_vm4 = vcmp.lt.s32.totalorder %v574_v3, %v575_v57  ;;  %v902_v44 = vsel %vm2102_vm13, %v1510_v36, 128  ;;  %vm966_vm9 = vcmp.lt.s32.totalorder %v963_v43, %v900_v1  ;;  %vm939_vm10 = vcmp.lt.s32.totalorder %v1867_v10, %v938_v30 }
 0x16b   :  { %v577_v50 = vsel %vm576_vm4, %v574_v3, %v575_v57  ;;  %v967_v4 = vsel %vm966_vm9, %v963_v43, %v900_v1  ;;  %vm968_vm14 = vcmp.lt.s32.totalorder %v965_v33, %v902_v44  ;;  %v2103_v36 = vlaneseq }
 0x16c   :  { %v578_v52 = vcombine.low %v538_v37, %v577_v50  ;;  %v969_v45 = vsel %vm968_vm14, %v965_v33, %v902_v44  ;;  %vm970_vm0 = vcmp.lt.s32.totalorder %v967_v4, %v904_v32  ;;  %v940_v20 = vsel %vm939_vm10, %v1867_v10, %v938_v30 }
 0x16d   :  { %v971_v17 = vsel %vm970_vm0, %v967_v4, %v904_v32  ;;  %vm1943_vm5 = vcmp.lt.s32.totalorder %v2103_v36, 256  ;;  %v941_v6 = vrot.slane %v940_v20, 1 }
 0x16e   :  { %v585_v26 = vrot.slane %v578_v52, %v1890_v41  ;;  %vm972_vm2 = vcmp.lt.s32.totalorder %v969_v45, %v971_v17 }
 0x16f   :  { %v973_v35 = vsel %vm972_vm2, %v969_v45, %v971_v17  ;;  %vm942_vm12 = vcmp.lt.s32.totalorder %v940_v20, %v941_v6 }
 0x170   :  { %v592_v19 = vrot.slane %v585_v26, %v1890_v41  ;;  %v974_v11 = vrot.slane %v973_v35, 4  ;;  %v943_v53 = vsel %vm942_vm12, %v940_v20, %v941_v6 }
 0x172   :  { %597 = vst.msk [vmem:[#allocation2] ss:$2 sm:$0x3] %vm1943_vm5, %v592_v19  ;;  %vm975_vm15 = vcmp.lt.s32.totalorder %v973_v35, %v974_v11 }
 0x173   :  { %v976_v21 = vsel %vm975_vm15, %v973_v35, %v974_v11 }
 0x174   :  { %v977_v60 = vrot.slane %v976_v21, 2 }
 0x176   :  { %vm978_vm7 = vcmp.lt.s32.totalorder %v976_v21, %v977_v60 }
 0x177   :  { %v979_v5 = vsel %vm978_vm7, %v976_v21, %v977_v60 }
 0x178   :  { %v980_v34 = vrot.slane %v979_v5, 1 }
 0x17a   :  { %vm981_vm11 = vcmp.lt.s32.totalorder %v979_v5, %v980_v34 }
 0x17b   :  { %v982_v47 = vsel %vm981_vm11, %v979_v5, %v980_v34 }
 0x17c   :  { %v983_v22 = vcombine.low %v943_v53, %v982_v47 }
 0x17e   :  { %v990_v56 = vrot.slane %v983_v22, %v1890_v41 }
 0x180   :  { %v997_v59 = vrot.slane %v990_v56, %v1890_v41 }
 0x182   :  { %999 = vst.msk [vmem:[#allocation2 + $0x1] ss:$2 sm:$0x3] %vm1943_vm5, %v997_v59 }
 0x183   :  { %1070 = shalt.err (!%p1067_p4)
}
 0x184   :  { %s1071_s26 = scalar_lea.hbm %s1970_s3, 64 }
 0x185   :  { %p1072_p5 = scmp.ne.s32.totalorder %s1970_s3, %s1071_s26  ;;  %p1075_p6 = scmp.lt.u32.totalorder %s1071_s26, %s1970_s3 }
 0x187   :  { %p1077_p7 = pnand %p1075_p6, %p1072_p5 }
 0x189   :  { %1080 = shalt.err (!%p1077_p7)
}
 0x18a   :  { %1009 = dma.vmem_to_hbm [thread:$0]  %s1007_s22, 64, %s1970_s3, [#allocation3]  }
 0x18b   :  { %1081 = dma.done.wait [#allocation3], 64  }
 0x18c   :  { %1082 = vsyncadd [#allocation3], 4294967232 }
 0x18d   :  { %1013 = vsyncpa [#allocation3], 1 }

</bundles_post_ra>
